<compile_context>
chip_gen: v7x
topology: tpu7x:2x2x1
jax: 0.10.0
libtpu: 0.0.40
codegen_flags: <defaults>
</compile_context>

<pallas_src>
import functools

import jax
import jax.numpy as jnp
from jax import lax
from jax.experimental import pallas as pl
from jax.experimental.pallas import tpu as pltpu


def _vmem_capacity_bytes():
    """Physical VMEM per core (v5e/v6e: 128 MiB, v7x: 64 MiB); safe fallback."""
    try:
        info = pltpu.get_tpu_info()
        cap = getattr(info, "vmem_capacity_bytes", None)
        if cap:
            return int(cap)
    except Exception:
        pass
    return 64 << 20  # conservative: fits every generation


def _plan_time_tiles(B, Cin, Cout, K, L, pad, itemsize, use_mxu, per_tap, time_tile):
    """Pick (TL, TH, n_t, vmem_limit): time tile, 128-aligned halo block, #tiles."""
    budget = min(int(_vmem_capacity_bytes() * 3 // 4), 96 << 20)  # generation-aware
    th = ((pad + 127) // 128) * 128 if pad > 0 else 0

    # Live bytes per lane-column of a time tile: x block (double-buffered) + ext
    # (+ the K-fold `wins` copy on the fused path) + f32 accumulator + out block.
    bpl = 3 * Cin * itemsize + Cout * (4 + 2 * itemsize)
    bpl += (K * Cin * itemsize) if (use_mxu and not per_tap) else (Cin * max(itemsize, 4))
    fixed = 2 * Cin * th * itemsize + (K * Cin * Cout + Cout) * 4 + (1 << 20)

    if time_tile is not None:
        tl = int(time_tile)
    else:
        avail = max(budget // 2 - fixed, 1 << 20)
        tl = min(avail // max(bpl, 1), 4096 if use_mxu else 512)
        tl = max(128, (tl // 128) * 128)

    if tl >= L:
        tl, th = L, 0
    elif th > 0:
        tl = max(th, (tl // th) * th)  # halo index-map invariant: TL % TH == 0
        want = 8 * th                  # keep halo re-read <= ~12.5% of input bytes (v5e)
        if time_tile is None and tl < want < L and want * bpl + fixed <= budget // 2:
            tl = want
        if tl >= L:
            tl, th = L, 0

    n_t = -(-L // tl)
    if n_t == 1:
        th = 0
        # v7x has 2 TensorCores sharded over "parallel" axes; avoid a single
        # grid step for medium single-batch problems by splitting time.
        if time_tile is None and B == 1 and L >= 256:
            unit = ((pad + 127) // 128) * 128 if pad > 0 else 128
            tl2 = ((-(-L // 2) + unit - 1) // unit) * unit
            if tl2 < L:
                tl, th = tl2, (unit if pad > 0 else 0)
                n_t = -(-L // tl)

    vmem_limit = max(budget, 32 << 20)
    return tl, th, n_t, vmem_limit


def _make_kernel(*, K, dilation, Cin, Cout, TL, TH, pad, has_halo, use_mxu, per_tap):
    def kernel(*refs):
        if has_halo:
            x_ref, h_ref, w_ref, b_ref, o_ref = refs
        else:
            x_ref, w_ref, b_ref, o_ref = refs
            h_ref = None

        x = x_ref[0]  # (Cin, TL)

        # Causal left context (`pad` lanes), built in VMEM: zeros for the first
        # time tile, the previous tile's tail (sliced at the ref) otherwise.
        if pad == 0:
            ext = x
        else:
            if has_halo:
                tail = h_ref[0, :, pl.ds(TH - pad, pad)]  # (Cin, pad)
                tail = jnp.where(pl.program_id(1) == 0, jnp.zeros_like(tail), tail)
            else:
                tail = jnp.zeros((Cin, pad), x.dtype)
            ext = jnp.concatenate([tail, x], axis=1)      # (Cin, TL + pad)

        bias = b_ref[...]  # (Cout, 1) float32
        mm = lambda a, b: lax.dot_general(
            a, b, (((1,), (0,)), ((), ())), preferred_element_type=jnp.float32)

        if use_mxu and per_tap:
            # Deep channels: K per-tap matmuls accumulated in f32 (no K-fold
            # `wins` copy of the input tile); the bias seeds the accumulator.
            acc = jnp.broadcast_to(bias, (Cout, TL))
            for k in range(K):
                acc = acc + mm(w_ref[k], ext[:, k * dilation:k * dilation + TL])
        elif use_mxu:
            # Shallow channels: fuse all K taps into one matmul of contraction
            # depth K*Cin so the MXU pipeline fills once per tile.
            wins = jnp.concatenate(
                [ext[:, k * dilation:k * dilation + TL] for k in range(K)], axis=0)
            acc = mm(w_ref[...], wins) + bias
        else:
            # Tiny channels (K*Cin < 32): lane-dense VPU shift-and-MAC, f32 acc.
            extf = ext.astype(jnp.float32)
            acc = jnp.broadcast_to(bias, (Cout, TL))
            for k in range(K):
                win = extf[:, k * dilation:k * dilation + TL]
                for ci in range(Cin):
                    acc = acc + w_ref[k * Cin + ci] * win[ci:ci + 1, :]

        o_ref[0] = acc.astype(o_ref.dtype)

    return kernel


@functools.partial(jax.jit, static_argnames=("dilation", "time_tile"))
def dilated_causal_conv(x, weight, bias, *, dilation, time_tile=None):
    """Causal dilated Conv1d.  x: (B, C_in, L); weight: (C_out, C_in, K); bias: (C_out,)."""
    B, Cin, L = x.shape
    Cout, _, K = weight.shape
    dilation = int(dilation)
    pad = (K - 1) * dilation

    # Short sequences: fold the batch into the lane axis so the output store is
    # lane-dense and the matmul sees ~B*L lanes.  Each sequence is left-padded
    # by `pad` zeros before packing, so tap windows never read across a batch
    # boundary; the first `pad` outputs of each segment are dropped on unpack.
    if B > 1 and L < 128:
        Lp = L + pad
        xp = jnp.pad(x, ((0, 0), (0, 0), (pad, 0)))                  # (B, Cin, L+pad)
        xp = jnp.transpose(xp, (1, 0, 2)).reshape(1, Cin, B * Lp)    # (1, Cin, B*Lp)
        yp = dilated_causal_conv(xp, weight, bias, dilation=dilation,
                                 time_tile=time_tile)                # (1, Cout, B*Lp)
        yp = yp.reshape(Cout, B, Lp)
        return jnp.transpose(yp, (1, 0, 2))[:, :, pad:]

    # TODO(synk): per-generation constants (MXU crossover 32 vs 64, per-tap depth
    # 128 vs 256) could be keyed off pltpu.get_tpu_info(); fixed values are used.
    use_mxu = (K * Cin) >= 32            # even a part-filled MXU beats unrolled VPU MACs
    per_tap = use_mxu and (Cin >= 128)   # deep contraction per tap -> skip `wins` copy

    TL, TH, n_t, vmem_limit = _plan_time_tiles(
        B, Cin, Cout, K, L, pad, x.dtype.itemsize, use_mxu, per_tap, time_tile)
    has_halo = (n_t > 1) and (pad > 0)

    # Weight / bias layouts prepared once.  The MXU path matmuls in x.dtype with
    # f32 accumulation; bf16 activations therefore use bf16 weights -- a small,
    # deliberate deviation from an all-f32 torch reference.
    if use_mxu and per_tap:
        w = jnp.transpose(weight, (2, 0, 1)).astype(x.dtype)                 # (K, Cout, Cin)
    elif use_mxu:
        w = jnp.transpose(weight, (0, 2, 1)).reshape(Cout, K * Cin).astype(x.dtype)  # (Cout, K*Cin)
    else:
        w = (jnp.transpose(weight, (2, 1, 0)).reshape(K * Cin, Cout)[..., None]
             .astype(jnp.float32))                                           # (K*Cin, Cout, 1)
    b = bias.reshape(Cout, 1).astype(jnp.float32)

    in_specs = [pl.BlockSpec((1, Cin, TL), lambda bi, ti: (bi, 0, ti))]
    operands = [x]
    if has_halo:
        r = TL // TH
        in_specs.append(pl.BlockSpec(
            (1, Cin, TH), lambda bi, ti: (bi, 0, jnp.maximum(ti * r - 1, 0))))
        operands.append(x)
    in_specs += [pl.BlockSpec(w.shape, lambda bi, ti: (0,) * w.ndim),
                 pl.BlockSpec((Cout, 1), lambda bi, ti: (0, 0))]
    operands += [w, b]

    kernel = _make_kernel(K=K, dilation=dilation, Cin=Cin, Cout=Cout, TL=TL, TH=TH,
                          pad=pad, has_halo=has_halo, use_mxu=use_mxu, per_tap=per_tap)

    return pl.pallas_call(
        kernel,
        out_shape=jax.ShapeDtypeStruct((B, Cout, L), x.dtype),
        grid=(B, n_t),
        in_specs=in_specs,
        out_specs=pl.BlockSpec((1, Cout, TL), lambda bi, ti: (bi, 0, ti)),
        compiler_params=pltpu.CompilerParams(
            dimension_semantics=("parallel", "parallel"),
            vmem_limit_bytes=int(vmem_limit),
        ),
    )(*operands)


def _reference(x, weight, bias, dilation):
    """Pure-JAX reference matching torch.nn.Conv1d + causal trim."""
    K = weight.shape[-1]
    pad = (K - 1) * dilation
    y = lax.conv_general_dilated(
        x, weight, window_strides=(1,), padding=[(pad, pad)],
        rhs_dilation=(dilation,), dimension_numbers=("NCH", "OIH", "NCH"))
    y = y + bias[None, :, None]
    return y[:, :, :-pad] if pad > 0 else y


def _bf16_representable(a):
    # Test data rounded to bf16-representable f32 so MXU operand rounding is
    # exact and the kernel checks tightly against the XLA reference regardless
    # of the backend's default matmul precision.
    return a.astype(jnp.bfloat16).astype(jnp.float32)


def _run_case(B, C, L, K, dilation, time_tile=None):
    key = jax.random.PRNGKey(0)
    kx, kw, kb = jax.random.split(key, 3)
    bound = 1.0 / ((C * K) ** 0.5)
    x = _bf16_representable(jax.random.normal(kx, (B, C, L), dtype=jnp.float32))
    w = _bf16_representable(jax.random.uniform(kw, (C, C, K), jnp.float32, -bound, bound))
    b = _bf16_representable(jax.random.uniform(kb, (C,), jnp.float32, -bound, bound))

    out = jax.block_until_ready(
        dilated_causal_conv(x, w, b, dilation=dilation, time_tile=time_tile))
    assert out.shape == x.shape, "Shape mismatch"

    ref = _reference(x, w, b, dilation)
    assert jnp.allclose(out, ref, atol=1e-4, rtol=1e-4), (
        f"Numerical mismatch vs reference (B={B}, C={C}, L={L}, K={K}, d={dilation})")


if __name__ == "__main__":
    # Primary small case consistent with the module (in_channels == out_channels):
    # tiny channels -> VPU path, batch folded into the lane axis.
    _run_case(B=2, C=8, L=16, K=3, dilation=2)
    # Fused-MXU path with a time halo and a partial last time tile.
    _run_case(B=2, C=16, L=576, K=3, dilation=4, time_tile=256)
    # Per-tap-MXU path (deep Cin) with a time halo.
    _run_case(B=1, C=128, L=384, K=2, dilation=3, time_tile=128)
    print("KERNEL_OK")
</pallas_src>

<mosaic_0001>
module attributes {stable_mosaic.version = 11 : i64} {
  func.func @kernel(%arg0: i32, %arg1: i32, %arg2: memref<1x8x40xf32, #tpu.memory_space<vmem>>, %arg3: memref<24x8x1xf32, #tpu.memory_space<vmem>>, %arg4: memref<8x1xf32, #tpu.memory_space<vmem>>, %arg5: memref<1x8x40xf32, #tpu.memory_space<vmem>>) attributes {dimension_semantics = [#tpu.dimension_semantics<parallel>, #tpu.dimension_semantics<parallel>], iteration_bounds = array<i64: 1, 1>, scalar_prefetch = 0 : i64, scratch_operands = 0 : i64, tpu.core_type = #tpu.core_type<tc>, window_params = [{transform_indices = @transform_0, window_bounds = array<i64: 1, 8, 40>}, {pipeline_mode = #tpu.pipeline_mode<synchronous>, transform_indices = @transform_1, window_bounds = array<i64: 24, 8, 1>}, {pipeline_mode = #tpu.pipeline_mode<synchronous>, transform_indices = @transform_2, window_bounds = array<i64: 8, 1>}, {transform_indices = @transform_3, window_bounds = array<i64: 1, 8, 40>}]} {
    %c0 = arith.constant 0 : index
    %c0_0 = arith.constant 0 : index
    %c0_1 = arith.constant 0 : index
    %0 = vector.load %arg2[%c0, %c0_0, %c0_1] : memref<1x8x40xf32, #tpu.memory_space<vmem>>, vector<1x8x40xf32>
    %1 = vector.shape_cast %0 : vector<1x8x40xf32> to vector<8x40xf32>
    %cst = arith.constant 0.000000e+00 : f32
    %2 = vector.broadcast %cst : f32 to vector<8x4xf32>
    %3 = tpu.concatenate %2, %1 in 1 : vector<8x4xf32>, vector<8x40xf32> -> vector<8x44xf32>
    %c0_2 = arith.constant 0 : index
    %c0_3 = arith.constant 0 : index
    %4 = vector.load %arg4[%c0_2, %c0_3] : memref<8x1xf32, #tpu.memory_space<vmem>>, vector<8x1xf32>
    %5 = vector.shape_cast %4 : vector<8x1xf32> to vector<8x1xf32>
    %6 = vector.broadcast %5 : vector<8x1xf32> to vector<8x40xf32>
    %7 = vector.extract_strided_slice %3 {offsets = [0, 0], sizes = [8, 40], strides = [1, 1]} : vector<8x44xf32> to vector<8x40xf32>
    %c0_4 = arith.constant 0 : index
    %c0_5 = arith.constant 0 : index
    %c0_6 = arith.constant 0 : index
    %8 = vector.load %arg3[%c0_4, %c0_5, %c0_6] : memref<24x8x1xf32, #tpu.memory_space<vmem>>, vector<1x8x1xf32>
    %9 = vector.shape_cast %8 : vector<1x8x1xf32> to vector<8x1xf32>
    %10 = vector.extract_strided_slice %7 {offsets = [0, 0], sizes = [1, 40], strides = [1, 1]} : vector<8x40xf32> to vector<1x40xf32>
    %11 = vector.broadcast %9 : vector<8x1xf32> to vector<8x40xf32>
    %12 = vector.broadcast %10 : vector<1x40xf32> to vector<8x40xf32>
    %13 = arith.mulf %11, %12 : vector<8x40xf32>
    %14 = arith.addf %6, %13 : vector<8x40xf32>
    %c1 = arith.constant 1 : index
    %c0_7 = arith.constant 0 : index
    %c0_8 = arith.constant 0 : index
    %15 = vector.load %arg3[%c1, %c0_7, %c0_8] : memref<24x8x1xf32, #tpu.memory_space<vmem>>, vector<1x8x1xf32>
    %16 = vector.shape_cast %15 : vector<1x8x1xf32> to vector<8x1xf32>
    %17 = vector.extract_strided_slice %7 {offsets = [1, 0], sizes = [1, 40], strides = [1, 1]} : vector<8x40xf32> to vector<1x40xf32>
    %18 = vector.broadcast %16 : vector<8x1xf32> to vector<8x40xf32>
    %19 = vector.broadcast %17 : vector<1x40xf32> to vector<8x40xf32>
    %20 = arith.mulf %18, %19 : vector<8x40xf32>
    %21 = arith.addf %14, %20 : vector<8x40xf32>
    %c2 = arith.constant 2 : index
    %c0_9 = arith.constant 0 : index
    %c0_10 = arith.constant 0 : index
    %22 = vector.load %arg3[%c2, %c0_9, %c0_10] : memref<24x8x1xf32, #tpu.memory_space<vmem>>, vector<1x8x1xf32>
    %23 = vector.shape_cast %22 : vector<1x8x1xf32> to vector<8x1xf32>
    %24 = vector.extract_strided_slice %7 {offsets = [2, 0], sizes = [1, 40], strides = [1, 1]} : vector<8x40xf32> to vector<1x40xf32>
    %25 = vector.broadcast %23 : vector<8x1xf32> to vector<8x40xf32>
    %26 = vector.broadcast %24 : vector<1x40xf32> to vector<8x40xf32>
    %27 = arith.mulf %25, %26 : vector<8x40xf32>
    %28 = arith.addf %21, %27 : vector<8x40xf32>
    %c3 = arith.constant 3 : index
    %c0_11 = arith.constant 0 : index
    %c0_12 = arith.constant 0 : index
    %29 = vector.load %arg3[%c3, %c0_11, %c0_12] : memref<24x8x1xf32, #tpu.memory_space<vmem>>, vector<1x8x1xf32>
    %30 = vector.shape_cast %29 : vector<1x8x1xf32> to vector<8x1xf32>
    %31 = vector.extract_strided_slice %7 {offsets = [3, 0], sizes = [1, 40], strides = [1, 1]} : vector<8x40xf32> to vector<1x40xf32>
    %32 = vector.broadcast %30 : vector<8x1xf32> to vector<8x40xf32>
    %33 = vector.broadcast %31 : vector<1x40xf32> to vector<8x40xf32>
    %34 = arith.mulf %32, %33 : vector<8x40xf32>
    %35 = arith.addf %28, %34 : vector<8x40xf32>
    %c4 = arith.constant 4 : index
    %c0_13 = arith.constant 0 : index
    %c0_14 = arith.constant 0 : index
    %36 = vector.load %arg3[%c4, %c0_13, %c0_14] : memref<24x8x1xf32, #tpu.memory_space<vmem>>, vector<1x8x1xf32>
    %37 = vector.shape_cast %36 : vector<1x8x1xf32> to vector<8x1xf32>
    %38 = vector.extract_strided_slice %7 {offsets = [4, 0], sizes = [1, 40], strides = [1, 1]} : vector<8x40xf32> to vector<1x40xf32>
    %39 = vector.broadcast %37 : vector<8x1xf32> to vector<8x40xf32>
    %40 = vector.broadcast %38 : vector<1x40xf32> to vector<8x40xf32>
    %41 = arith.mulf %39, %40 : vector<8x40xf32>
    %42 = arith.addf %35, %41 : vector<8x40xf32>
    %c5 = arith.constant 5 : index
    %c0_15 = arith.constant 0 : index
    %c0_16 = arith.constant 0 : index
    %43 = vector.load %arg3[%c5, %c0_15, %c0_16] : memref<24x8x1xf32, #tpu.memory_space<vmem>>, vector<1x8x1xf32>
    %44 = vector.shape_cast %43 : vector<1x8x1xf32> to vector<8x1xf32>
    %45 = vector.extract_strided_slice %7 {offsets = [5, 0], sizes = [1, 40], strides = [1, 1]} : vector<8x40xf32> to vector<1x40xf32>
    %46 = vector.broadcast %44 : vector<8x1xf32> to vector<8x40xf32>
    %47 = vector.broadcast %45 : vector<1x40xf32> to vector<8x40xf32>
    %48 = arith.mulf %46, %47 : vector<8x40xf32>
    %49 = arith.addf %42, %48 : vector<8x40xf32>
    %c6 = arith.constant 6 : index
    %c0_17 = arith.constant 0 : index
    %c0_18 = arith.constant 0 : index
    %50 = vector.load %arg3[%c6, %c0_17, %c0_18] : memref<24x8x1xf32, #tpu.memory_space<vmem>>, vector<1x8x1xf32>
    %51 = vector.shape_cast %50 : vector<1x8x1xf32> to vector<8x1xf32>
    %52 = vector.extract_strided_slice %7 {offsets = [6, 0], sizes = [1, 40], strides = [1, 1]} : vector<8x40xf32> to vector<1x40xf32>
    %53 = vector.broadcast %51 : vector<8x1xf32> to vector<8x40xf32>
    %54 = vector.broadcast %52 : vector<1x40xf32> to vector<8x40xf32>
    %55 = arith.mulf %53, %54 : vector<8x40xf32>
    %56 = arith.addf %49, %55 : vector<8x40xf32>
    %c7 = arith.constant 7 : index
    %c0_19 = arith.constant 0 : index
    %c0_20 = arith.constant 0 : index
    %57 = vector.load %arg3[%c7, %c0_19, %c0_20] : memref<24x8x1xf32, #tpu.memory_space<vmem>>, vector<1x8x1xf32>
    %58 = vector.shape_cast %57 : vector<1x8x1xf32> to vector<8x1xf32>
    %59 = vector.extract_strided_slice %7 {offsets = [7, 0], sizes = [1, 40], strides = [1, 1]} : vector<8x40xf32> to vector<1x40xf32>
    %60 = vector.broadcast %58 : vector<8x1xf32> to vector<8x40xf32>
    %61 = vector.broadcast %59 : vector<1x40xf32> to vector<8x40xf32>
    %62 = arith.mulf %60, %61 : vector<8x40xf32>
    %63 = arith.addf %56, %62 : vector<8x40xf32>
    %64 = vector.extract_strided_slice %3 {offsets = [0, 2], sizes = [8, 40], strides = [1, 1]} : vector<8x44xf32> to vector<8x40xf32>
    %c8 = arith.constant 8 : index
    %c0_21 = arith.constant 0 : index
    %c0_22 = arith.constant 0 : index
    %65 = vector.load %arg3[%c8, %c0_21, %c0_22] : memref<24x8x1xf32, #tpu.memory_space<vmem>>, vector<1x8x1xf32>
    %66 = vector.shape_cast %65 : vector<1x8x1xf32> to vector<8x1xf32>
    %67 = vector.extract_strided_slice %64 {offsets = [0, 0], sizes = [1, 40], strides = [1, 1]} : vector<8x40xf32> to vector<1x40xf32>
    %68 = vector.broadcast %66 : vector<8x1xf32> to vector<8x40xf32>
    %69 = vector.broadcast %67 : vector<1x40xf32> to vector<8x40xf32>
    %70 = arith.mulf %68, %69 : vector<8x40xf32>
    %71 = arith.addf %63, %70 : vector<8x40xf32>
    %c9 = arith.constant 9 : index
    %c0_23 = arith.constant 0 : index
    %c0_24 = arith.constant 0 : index
    %72 = vector.load %arg3[%c9, %c0_23, %c0_24] : memref<24x8x1xf32, #tpu.memory_space<vmem>>, vector<1x8x1xf32>
    %73 = vector.shape_cast %72 : vector<1x8x1xf32> to vector<8x1xf32>
    %74 = vector.extract_strided_slice %64 {offsets = [1, 0], sizes = [1, 40], strides = [1, 1]} : vector<8x40xf32> to vector<1x40xf32>
    %75 = vector.broadcast %73 : vector<8x1xf32> to vector<8x40xf32>
    %76 = vector.broadcast %74 : vector<1x40xf32> to vector<8x40xf32>
    %77 = arith.mulf %75, %76 : vector<8x40xf32>
    %78 = arith.addf %71, %77 : vector<8x40xf32>
    %c10 = arith.constant 10 : index
    %c0_25 = arith.constant 0 : index
    %c0_26 = arith.constant 0 : index
    %79 = vector.load %arg3[%c10, %c0_25, %c0_26] : memref<24x8x1xf32, #tpu.memory_space<vmem>>, vector<1x8x1xf32>
    %80 = vector.shape_cast %79 : vector<1x8x1xf32> to vector<8x1xf32>
    %81 = vector.extract_strided_slice %64 {offsets = [2, 0], sizes = [1, 40], strides = [1, 1]} : vector<8x40xf32> to vector<1x40xf32>
    %82 = vector.broadcast %80 : vector<8x1xf32> to vector<8x40xf32>
    %83 = vector.broadcast %81 : vector<1x40xf32> to vector<8x40xf32>
    %84 = arith.mulf %82, %83 : vector<8x40xf32>
    %85 = arith.addf %78, %84 : vector<8x40xf32>
    %c11 = arith.constant 11 : index
    %c0_27 = arith.constant 0 : index
    %c0_28 = arith.constant 0 : index
    %86 = vector.load %arg3[%c11, %c0_27, %c0_28] : memref<24x8x1xf32, #tpu.memory_space<vmem>>, vector<1x8x1xf32>
    %87 = vector.shape_cast %86 : vector<1x8x1xf32> to vector<8x1xf32>
    %88 = vector.extract_strided_slice %64 {offsets = [3, 0], sizes = [1, 40], strides = [1, 1]} : vector<8x40xf32> to vector<1x40xf32>
    %89 = vector.broadcast %87 : vector<8x1xf32> to vector<8x40xf32>
    %90 = vector.broadcast %88 : vector<1x40xf32> to vector<8x40xf32>
    %91 = arith.mulf %89, %90 : vector<8x40xf32>
    %92 = arith.addf %85, %91 : vector<8x40xf32>
    %c12 = arith.constant 12 : index
    %c0_29 = arith.constant 0 : index
    %c0_30 = arith.constant 0 : index
    %93 = vector.load %arg3[%c12, %c0_29, %c0_30] : memref<24x8x1xf32, #tpu.memory_space<vmem>>, vector<1x8x1xf32>
    %94 = vector.shape_cast %93 : vector<1x8x1xf32> to vector<8x1xf32>
    %95 = vector.extract_strided_slice %64 {offsets = [4, 0], sizes = [1, 40], strides = [1, 1]} : vector<8x40xf32> to vector<1x40xf32>
    %96 = vector.broadcast %94 : vector<8x1xf32> to vector<8x40xf32>
    %97 = vector.broadcast %95 : vector<1x40xf32> to vector<8x40xf32>
    %98 = arith.mulf %96, %97 : vector<8x40xf32>
    %99 = arith.addf %92, %98 : vector<8x40xf32>
    %c13 = arith.constant 13 : index
    %c0_31 = arith.constant 0 : index
    %c0_32 = arith.constant 0 : index
    %100 = vector.load %arg3[%c13, %c0_31, %c0_32] : memref<24x8x1xf32, #tpu.memory_space<vmem>>, vector<1x8x1xf32>
    %101 = vector.shape_cast %100 : vector<1x8x1xf32> to vector<8x1xf32>
    %102 = vector.extract_strided_slice %64 {offsets = [5, 0], sizes = [1, 40], strides = [1, 1]} : vector<8x40xf32> to vector<1x40xf32>
    %103 = vector.broadcast %101 : vector<8x1xf32> to vector<8x40xf32>
    %104 = vector.broadcast %102 : vector<1x40xf32> to vector<8x40xf32>
    %105 = arith.mulf %103, %104 : vector<8x40xf32>
    %106 = arith.addf %99, %105 : vector<8x40xf32>
    %c14 = arith.constant 14 : index
    %c0_33 = arith.constant 0 : index
    %c0_34 = arith.constant 0 : index
    %107 = vector.load %arg3[%c14, %c0_33, %c0_34] : memref<24x8x1xf32, #tpu.memory_space<vmem>>, vector<1x8x1xf32>
    %108 = vector.shape_cast %107 : vector<1x8x1xf32> to vector<8x1xf32>
    %109 = vector.extract_strided_slice %64 {offsets = [6, 0], sizes = [1, 40], strides = [1, 1]} : vector<8x40xf32> to vector<1x40xf32>
    %110 = vector.broadcast %108 : vector<8x1xf32> to vector<8x40xf32>
    %111 = vector.broadcast %109 : vector<1x40xf32> to vector<8x40xf32>
    %112 = arith.mulf %110, %111 : vector<8x40xf32>
    %113 = arith.addf %106, %112 : vector<8x40xf32>
    %c15 = arith.constant 15 : index
    %c0_35 = arith.constant 0 : index
    %c0_36 = arith.constant 0 : index
    %114 = vector.load %arg3[%c15, %c0_35, %c0_36] : memref<24x8x1xf32, #tpu.memory_space<vmem>>, vector<1x8x1xf32>
    %115 = vector.shape_cast %114 : vector<1x8x1xf32> to vector<8x1xf32>
    %116 = vector.extract_strided_slice %64 {offsets = [7, 0], sizes = [1, 40], strides = [1, 1]} : vector<8x40xf32> to vector<1x40xf32>
    %117 = vector.broadcast %115 : vector<8x1xf32> to vector<8x40xf32>
    %118 = vector.broadcast %116 : vector<1x40xf32> to vector<8x40xf32>
    %119 = arith.mulf %117, %118 : vector<8x40xf32>
    %120 = arith.addf %113, %119 : vector<8x40xf32>
    %121 = vector.extract_strided_slice %3 {offsets = [0, 4], sizes = [8, 40], strides = [1, 1]} : vector<8x44xf32> to vector<8x40xf32>
    %c16 = arith.constant 16 : index
    %c0_37 = arith.constant 0 : index
    %c0_38 = arith.constant 0 : index
    %122 = vector.load %arg3[%c16, %c0_37, %c0_38] : memref<24x8x1xf32, #tpu.memory_space<vmem>>, vector<1x8x1xf32>
    %123 = vector.shape_cast %122 : vector<1x8x1xf32> to vector<8x1xf32>
    %124 = vector.extract_strided_slice %121 {offsets = [0, 0], sizes = [1, 40], strides = [1, 1]} : vector<8x40xf32> to vector<1x40xf32>
    %125 = vector.broadcast %123 : vector<8x1xf32> to vector<8x40xf32>
    %126 = vector.broadcast %124 : vector<1x40xf32> to vector<8x40xf32>
    %127 = arith.mulf %125, %126 : vector<8x40xf32>
    %128 = arith.addf %120, %127 : vector<8x40xf32>
    %c17 = arith.constant 17 : index
    %c0_39 = arith.constant 0 : index
    %c0_40 = arith.constant 0 : index
    %129 = vector.load %arg3[%c17, %c0_39, %c0_40] : memref<24x8x1xf32, #tpu.memory_space<vmem>>, vector<1x8x1xf32>
    %130 = vector.shape_cast %129 : vector<1x8x1xf32> to vector<8x1xf32>
    %131 = vector.extract_strided_slice %121 {offsets = [1, 0], sizes = [1, 40], strides = [1, 1]} : vector<8x40xf32> to vector<1x40xf32>
    %132 = vector.broadcast %130 : vector<8x1xf32> to vector<8x40xf32>
    %133 = vector.broadcast %131 : vector<1x40xf32> to vector<8x40xf32>
    %134 = arith.mulf %132, %133 : vector<8x40xf32>
    %135 = arith.addf %128, %134 : vector<8x40xf32>
    %c18 = arith.constant 18 : index
    %c0_41 = arith.constant 0 : index
    %c0_42 = arith.constant 0 : index
    %136 = vector.load %arg3[%c18, %c0_41, %c0_42] : memref<24x8x1xf32, #tpu.memory_space<vmem>>, vector<1x8x1xf32>
    %137 = vector.shape_cast %136 : vector<1x8x1xf32> to vector<8x1xf32>
    %138 = vector.extract_strided_slice %121 {offsets = [2, 0], sizes = [1, 40], strides = [1, 1]} : vector<8x40xf32> to vector<1x40xf32>
    %139 = vector.broadcast %137 : vector<8x1xf32> to vector<8x40xf32>
    %140 = vector.broadcast %138 : vector<1x40xf32> to vector<8x40xf32>
    %141 = arith.mulf %139, %140 : vector<8x40xf32>
    %142 = arith.addf %135, %141 : vector<8x40xf32>
    %c19 = arith.constant 19 : index
    %c0_43 = arith.constant 0 : index
    %c0_44 = arith.constant 0 : index
    %143 = vector.load %arg3[%c19, %c0_43, %c0_44] : memref<24x8x1xf32, #tpu.memory_space<vmem>>, vector<1x8x1xf32>
    %144 = vector.shape_cast %143 : vector<1x8x1xf32> to vector<8x1xf32>
    %145 = vector.extract_strided_slice %121 {offsets = [3, 0], sizes = [1, 40], strides = [1, 1]} : vector<8x40xf32> to vector<1x40xf32>
    %146 = vector.broadcast %144 : vector<8x1xf32> to vector<8x40xf32>
    %147 = vector.broadcast %145 : vector<1x40xf32> to vector<8x40xf32>
    %148 = arith.mulf %146, %147 : vector<8x40xf32>
    %149 = arith.addf %142, %148 : vector<8x40xf32>
    %c20 = arith.constant 20 : index
    %c0_45 = arith.constant 0 : index
    %c0_46 = arith.constant 0 : index
    %150 = vector.load %arg3[%c20, %c0_45, %c0_46] : memref<24x8x1xf32, #tpu.memory_space<vmem>>, vector<1x8x1xf32>
    %151 = vector.shape_cast %150 : vector<1x8x1xf32> to vector<8x1xf32>
    %152 = vector.extract_strided_slice %121 {offsets = [4, 0], sizes = [1, 40], strides = [1, 1]} : vector<8x40xf32> to vector<1x40xf32>
    %153 = vector.broadcast %151 : vector<8x1xf32> to vector<8x40xf32>
    %154 = vector.broadcast %152 : vector<1x40xf32> to vector<8x40xf32>
    %155 = arith.mulf %153, %154 : vector<8x40xf32>
    %156 = arith.addf %149, %155 : vector<8x40xf32>
    %c21 = arith.constant 21 : index
    %c0_47 = arith.constant 0 : index
    %c0_48 = arith.constant 0 : index
    %157 = vector.load %arg3[%c21, %c0_47, %c0_48] : memref<24x8x1xf32, #tpu.memory_space<vmem>>, vector<1x8x1xf32>
    %158 = vector.shape_cast %157 : vector<1x8x1xf32> to vector<8x1xf32>
    %159 = vector.extract_strided_slice %121 {offsets = [5, 0], sizes = [1, 40], strides = [1, 1]} : vector<8x40xf32> to vector<1x40xf32>
    %160 = vector.broadcast %158 : vector<8x1xf32> to vector<8x40xf32>
    %161 = vector.broadcast %159 : vector<1x40xf32> to vector<8x40xf32>
    %162 = arith.mulf %160, %161 : vector<8x40xf32>
    %163 = arith.addf %156, %162 : vector<8x40xf32>
    %c22 = arith.constant 22 : index
    %c0_49 = arith.constant 0 : index
    %c0_50 = arith.constant 0 : index
    %164 = vector.load %arg3[%c22, %c0_49, %c0_50] : memref<24x8x1xf32, #tpu.memory_space<vmem>>, vector<1x8x1xf32>
    %165 = vector.shape_cast %164 : vector<1x8x1xf32> to vector<8x1xf32>
    %166 = vector.extract_strided_slice %121 {offsets = [6, 0], sizes = [1, 40], strides = [1, 1]} : vector<8x40xf32> to vector<1x40xf32>
    %167 = vector.broadcast %165 : vector<8x1xf32> to vector<8x40xf32>
    %168 = vector.broadcast %166 : vector<1x40xf32> to vector<8x40xf32>
    %169 = arith.mulf %167, %168 : vector<8x40xf32>
    %170 = arith.addf %163, %169 : vector<8x40xf32>
    %c23 = arith.constant 23 : index
    %c0_51 = arith.constant 0 : index
    %c0_52 = arith.constant 0 : index
    %171 = vector.load %arg3[%c23, %c0_51, %c0_52] : memref<24x8x1xf32, #tpu.memory_space<vmem>>, vector<1x8x1xf32>
    %172 = vector.shape_cast %171 : vector<1x8x1xf32> to vector<8x1xf32>
    %173 = vector.extract_strided_slice %121 {offsets = [7, 0], sizes = [1, 40], strides = [1, 1]} : vector<8x40xf32> to vector<1x40xf32>
    %174 = vector.broadcast %172 : vector<8x1xf32> to vector<8x40xf32>
    %175 = vector.broadcast %173 : vector<1x40xf32> to vector<8x40xf32>
    %176 = arith.mulf %174, %175 : vector<8x40xf32>
    %177 = arith.addf %170, %176 : vector<8x40xf32>
    %c0_53 = arith.constant 0 : index
    %c0_54 = arith.constant 0 : index
    %c0_55 = arith.constant 0 : index
    %178 = vector.load %arg5[%c0_53, %c0_54, %c0_55] : memref<1x8x40xf32, #tpu.memory_space<vmem>>, vector<1x8x40xf32>
    %179 = vector.shape_cast %178 : vector<1x8x40xf32> to vector<8x40xf32>
    %180 = vector.shape_cast %177 : vector<8x40xf32> to vector<1x8x40xf32>
    tpu.vector_store %arg5[%c0_53, %c0_54, %c0_55], %180 {strides = array<i32>} : memref<1x8x40xf32, #tpu.memory_space<vmem>>, vector<1x8x40xf32>,
    return
  }
  func.func @transform_0(%arg0: i32, %arg1: i32) -> (i32, i32, i32) {
    %c0_i32 = arith.constant 0 : i32
    %c0_i32_0 = arith.constant 0 : i32
    return %arg0, %c0_i32, %arg1 : i32, i32, i32
  }
  func.func @transform_1(%arg0: i32, %arg1: i32) -> (i32, i32, i32) {
    %c0_i32 = arith.constant 0 : i32
    %c0_i32_0 = arith.constant 0 : i32
    %c0_i32_1 = arith.constant 0 : i32
    %c0_i32_2 = arith.constant 0 : i32
    return %c0_i32, %c0_i32_0, %c0_i32_1 : i32, i32, i32
  }
  func.func @transform_2(%arg0: i32, %arg1: i32) -> (i32, i32) {
    %c0_i32 = arith.constant 0 : i32
    %c0_i32_0 = arith.constant 0 : i32
    %c0_i32_1 = arith.constant 0 : i32
    return %c0_i32, %c0_i32_0 : i32, i32
  }
  func.func @transform_3(%arg0: i32, %arg1: i32) -> (i32, i32, i32) {
    %c0_i32 = arith.constant 0 : i32
    %c0_i32_0 = arith.constant 0 : i32
    return %arg0, %c0_i32, %arg1 : i32, i32, i32
  }
}

</mosaic_0001>

<bundles_post_ra>
// kernel: dilated_causal_conv.1
= control target key start
LH: loop header
LB: loop body
LE: loop exit
PB: predicated region body
PF: predicated region fallthrough
CT: control target
= control target key end

     0   :  { %v409_v2 = vmov 0   ;;  %s410_s16 = smov 4   ;;  %s547_s0 = inlined_call_operand.vmem [shape: f32[1,8,40], index: 0, kind: input, shape index: {}]   ;;  %s548_s1 = inlined_call_operand.vmem [shape: f32[24,8,1], index: 1, kind: input, shape index: {}]   ;;  %s549_s2 = inlined_call_operand.vmem [shape: f32[8,1], index: 2, kind: input, shape index: {}]   ;;  %s550_s3 = inlined_call_operand.hbm [shape: f32[1,8,40], index: 3, kind: output, shape index: {}]  }
   0x1   :  { %v15_v0 = vld [vmem:[%s547_s0] sm:$0xff]  ;;  %383 = vset.pattern.permute.xlu0 %v409_v2  ;;  %384 = vset.pattern.permute.xlu1 %v409_v2  ;;  %v364_v3 = vld [vmem:[%s548_s1 + $0x50] sm:$0xff]  ;;  %v363_v4 = vld [vmem:[%s548_s1 + $0x48] sm:$0xff] }
   0x2   :  { %v362_v1 = vld [vmem:[%s548_s1 + $0x40] sm:$0xff]  ;;  %17 = vrot.lane.b32.xlu1 %v15_v0, %s410_s16  ;;  %v365_v6 = vld [vmem:[%s548_s1 + $0x58] sm:$0xff] }
   0x3   :  { %135 = vperm.xlu0 %383, %v362_v1   ;;  %v366_v5 = vld [vmem:[%s548_s1 + $0x60] sm:$0xff] }
   0x6   :  { %161 = vperm.xlu1 %384, %v364_v3  }
   0x7   :  { %148 = vperm.xlu0 %383, %v363_v4  }
   0x8   :  { %8 = vsyncpa [#allocation3], 0  ;;  %v368_v7 = vld [vmem:[%s548_s1 + $0x70] sm:$0xff]  ;;  %v367_v8 = vld [vmem:[%s548_s1 + $0x68] sm:$0xff]  ;;  %v34_v27 = vlaneseq  ;;  %vm20_vm0 = vcmask 31744   ;;  %s411_s8 = smov 126  }
   0x9   :  { %v370_v9 = vld [vmem:[%s548_s1 + $0x80] sm:$0xff]  ;;  %v369_v10 = vld [vmem:[%s548_s1 + $0x78] sm:$0xff]  ;;  %v372_v11 = vld [vmem:[%s548_s1 + $0x90] sm:$0xff]  ;;  %s413_s9 = smov [#allocation2]   ;;  %vm339_vm1 = vcmask 326656  }
   0xa   :  { %187 = vperm.xlu1 %384, %v366_v5   ;;  %v371_v12 = vld [vmem:[%s548_s1 + $0x88] sm:$0xff]  ;;  %v374_v13 = vld [vmem:[%s548_s1 + $0xa0] sm:$0xff]  ;;  %v373_v14 = vld [vmem:[%s548_s1 + $0x98] sm:$0xff]  ;;  %v35_v28 = vshrl.u32 %v34_v27, 7  ;;  %s347_s10 = sshll.u32 %s413_s9, 4  ;;  %s348_s10 = int_to_ptr.vmem [resolvable:$true] %s347_s10 }
   0xb   :  { %174 = vperm.xlu0 %383, %v365_v6   ;;  %v376_v15 = vld [vmem:[%s548_s1 + $0xb0] sm:$0xff]  ;;  %v375_v16 = vld [vmem:[%s548_s1 + $0xa8] sm:$0xff]  ;;  %v28_v17 = vld [vmem:[%s548_s1] sm:$0xff]  ;;  %s385_s11 = scalar_lea.vmem %s348_s10, 128  ;;  %p390_p1 = scmp.lt.s32.totalorder %s348_s10, %s348_s10 }
   0xc   :  { %v377_v18 = vld [vmem:[%s548_s1 + $0xb8] sm:$0xff]  ;;  %v355_v19 = vld [vmem:[%s548_s1 + $0x8] sm:$0xff]  ;;  %v22_v20 = vld [vmem:[%s549_s2] sm:$0xff]  ;;  %v36_v30 = vsub.s32 0, %v35_v28  ;;  %v62_v32 = vsub.s32 2, %v35_v28  ;;  %v49_v34 = vsub.s32 1, %v35_v28  ;;  %p386_p0 = scmp.ne.s32.totalorder %s348_s10, %s385_s11  ;;  %p391_p2 = scmp.lt.s32.totalorder %s385_s11, %s385_s11 }
   0xd   :  { %v357_v21 = vld [vmem:[%s548_s1 + $0x18] sm:$0xff]  ;;  %v356_v22 = vld [vmem:[%s548_s1 + $0x10] sm:$0xff]  ;;  %v359_v23 = vld [vmem:[%s548_s1 + $0x28] sm:$0xff]  ;;  %v88_v38 = vsub.s32 4, %v35_v28  ;;  %v75_v41 = vsub.s32 3, %v35_v28  ;;  %v114_v46 = vsub.s32 6, %v35_v28 }
   0xe   :  { %213 = vperm.xlu1 %384, %v368_v7   ;;  %v358_v24 = vld [vmem:[%s548_s1 + $0x20] sm:$0xff]  ;;  %v361_v25 = vld [vmem:[%s548_s1 + $0x38] sm:$0xff]  ;;  %v360_v26 = vld [vmem:[%s548_s1 + $0x30] sm:$0xff]  ;;  %v101_v49 = vsub.s32 5, %v35_v28  ;;  %v127_v56 = vsub.s32 7, %v35_v28  ;;  %s412_s1 = smov 124   ;;  %p392_p3 = por %p391_p2, %p390_p1 }
   0xf   :  { %200 = vperm.xlu0 %383, %v367_v8  }
  0x10   :  { %p393_p4 = pnand %p392_p3, %p386_p0 }
  0x12   :  { %239 = vperm.xlu1 %384, %v370_v9  }
  0x13   :  { %226 = vperm.xlu0 %383, %v369_v10  }
  0x16   :  { %265 = vperm.xlu1 %384, %v372_v11  }
  0x17   :  { %252 = vperm.xlu0 %383, %v371_v12  }
  0x1a   :  { %291 = vperm.xlu1 %384, %v374_v13  }
  0x1b   :  { %278 = vperm.xlu0 %383, %v373_v14  }
  0x1e   :  { %317 = vperm.xlu1 %384, %v376_v15  }
  0x1f   :  { %304 = vperm.xlu0 %383, %v375_v16  }
  0x22   :  { %31 = vperm.xlu1 %384, %v28_v17  }
  0x23   :  { %330 = vperm.xlu0 %383, %v377_v18  }
  0x26   :  { %44 = vperm.xlu1 %384, %v355_v19  }
  0x27   :  { %25 = vperm.xlu0 %383, %v22_v20  }
  0x2a   :  { %70 = vperm.xlu1 %384, %v357_v21  }
  0x2b   :  { %57 = vperm.xlu0 %383, %v356_v22  }
  0x2e   :  { %96 = vperm.xlu1 %384, %v359_v23  }
  0x2f   :  { %83 = vperm.xlu0 %383, %v358_v24  }
  0x32   :  { %122 = vperm.xlu1 %384, %v361_v25  }
  0x33   :  { %109 = vperm.xlu0 %383, %v360_v26  }
  0x74   :  { %v18_v29 = vpop.permute.xlu1 %17 }
  0x75   :  { %v21_v31 = vsel %vm20_vm0, 0.0, %v18_v29 }
  0x76   :  { %v512_v33 = vrot.slane %v21_v31, %v36_v30  ;;  %v515_v37 = vrot.slane %v21_v31, %v62_v32  ;;  %v50_v40 = vrot.slane %v21_v31, %v49_v34  ;;  %v519_v45 = vrot.slane %v21_v31, %v88_v38 }
  0x77   :  { %v76_v48 = vrot.slane %v21_v31, %v75_v41  ;;  %v115_v53 = vrot.slane %v21_v31, %v114_v46  ;;  %v102_v55 = vrot.slane %v21_v31, %v101_v49  ;;  %v128_v61 = vrot.slane %v21_v31, %v127_v56 }
  0x82   :  { %v136_v35 = vpop.permute.xlu0 %135 }
  0x83   :  { %v138_v36 = vmul.f32 %v136_v35, %v512_v33 }
  0x85   :  { %140 = vrot.lane.b32.xlu0 %v138_v36, %s411_s8  ;;  %v162_v39 = vpop.permute.xlu1 %161 }
  0x86   :  { %v164_v42 = vmul.f32 %v162_v39, %v515_v37  ;;  %v149_v43 = vpop.permute.xlu0 %148 }
  0x87   :  { %v151_v44 = vmul.f32 %v149_v43, %v50_v40 }
  0x89   :  { %153 = vrot.lane.b32.xlu1 %v151_v44, %s411_s8  ;;  %166 = vrot.lane.b32.xlu0 %v164_v42, %s411_s8  ;;  %v188_v47 = vpop.permute.xlu1 %187 }
  0x8a   :  { %v190_v50 = vmul.f32 %v188_v47, %v519_v45  ;;  %v175_v51 = vpop.permute.xlu0 %174 }
  0x8b   :  { %v177_v52 = vmul.f32 %v175_v51, %v76_v48 }
  0x8d   :  { %179 = vrot.lane.b32.xlu1 %v177_v52, %s411_s8  ;;  %192 = vrot.lane.b32.xlu0 %v190_v50, %s411_s8  ;;  %v214_v54 = vpop.permute.xlu1 %213 }
  0x8e   :  { %v216_v57 = vmul.f32 %v214_v54, %v115_v53  ;;  %v201_v58 = vpop.permute.xlu0 %200 }
  0x8f   :  { %v203_v59 = vmul.f32 %v201_v58, %v102_v55 }
  0x91   :  { %205 = vrot.lane.b32.xlu1 %v203_v59, %s411_s8  ;;  %218 = vrot.lane.b32.xlu0 %v216_v57, %s411_s8  ;;  %v240_v60 = vpop.permute.xlu1 %239 }
  0x92   :  { %v242_v62 = vmul.f32 %v240_v60, %v512_v33  ;;  %v227_v63 = vpop.permute.xlu0 %226 }
  0x93   :  { %v229_v0 = vmul.f32 %v227_v63, %v128_v61 }
  0x95   :  { %231 = vrot.lane.b32.xlu1 %v229_v0, %s411_s8  ;;  %244 = vrot.lane.b32.xlu0 %v242_v62, %s412_s1  ;;  %v266_v1 = vpop.permute.xlu1 %265 }
  0x96   :  { %v268_v2 = vmul.f32 %v266_v1, %v515_v37  ;;  %v253_v3 = vpop.permute.xlu0 %252 }
  0x97   :  { %v255_v4 = vmul.f32 %v253_v3, %v50_v40 }
  0x99   :  { %257 = vrot.lane.b32.xlu1 %v255_v4, %s412_s1  ;;  %270 = vrot.lane.b32.xlu0 %v268_v2, %s412_s1  ;;  %v292_v5 = vpop.permute.xlu1 %291 }
  0x9a   :  { %v294_v6 = vmul.f32 %v292_v5, %v519_v45  ;;  %v279_v7 = vpop.permute.xlu0 %278 }
  0x9b   :  { %v281_v8 = vmul.f32 %v279_v7, %v76_v48 }
  0x9d   :  { %283 = vrot.lane.b32.xlu1 %v281_v8, %s412_s1  ;;  %296 = vrot.lane.b32.xlu0 %v294_v6, %s412_s1  ;;  %v318_v9 = vpop.permute.xlu1 %317 }
  0x9e   :  { %v320_v10 = vmul.f32 %v318_v9, %v115_v53  ;;  %v305_v11 = vpop.permute.xlu0 %304 }
  0x9f   :  { %v307_v12 = vmul.f32 %v305_v11, %v102_v55 }
  0xa1   :  { %309 = vrot.lane.b32.xlu1 %v307_v12, %s412_s1  ;;  %322 = vrot.lane.b32.xlu0 %v320_v10, %s412_s1  ;;  %v32_v13 = vpop.permute.xlu1 %31 }
  0xa2   :  { %v331_v14 = vpop.permute.xlu0 %330  ;;  %v38_v16 = vmul.f32 %v512_v33, %v32_v13 }
  0xa3   :  { %v333_v15 = vmul.f32 %v331_v14, %v128_v61 }
  0xa5   :  { %335 = vrot.lane.b32.xlu1 %v333_v15, %s412_s1  ;;  %v45_v17 = vpop.permute.xlu1 %44 }
  0xa6   :  { %v51_v18 = vmul.f32 %v50_v40, %v45_v17  ;;  %v26_v19 = vpop.permute.xlu0 %25 }
  0xa7   :  { %v39_v20 = vadd.f32 %v38_v16, %v26_v19 }
  0xa9   :  { %v52_v21 = vadd.f32 %v51_v18, %v39_v20  ;;  %v71_v22 = vpop.permute.xlu1 %70 }
  0xaa   :  { %v58_v23 = vpop.permute.xlu0 %57  ;;  %v77_v25 = vmul.f32 %v76_v48, %v71_v22 }
  0xab   :  { %v64_v24 = vmul.f32 %v515_v37, %v58_v23 }
  0xad   :  { %v65_v26 = vadd.f32 %v64_v24, %v52_v21  ;;  %v97_v27 = vpop.permute.xlu1 %96 }
  0xae   :  { %v84_v28 = vpop.permute.xlu0 %83  ;;  %v103_v31 = vmul.f32 %v102_v55, %v97_v27 }
  0xaf   :  { %v78_v29 = vadd.f32 %v77_v25, %v65_v26  ;;  %v90_v30 = vmul.f32 %v519_v45, %v84_v28 }
  0xb1   :  { %v91_v32 = vadd.f32 %v90_v30, %v78_v29  ;;  %v123_v33 = vpop.permute.xlu1 %122 }
  0xb2   :  { %v110_v34 = vpop.permute.xlu0 %109  ;;  %v129_v38 = vmul.f32 %v128_v61, %v123_v33 }
  0xb3   :  { %v104_v35 = vadd.f32 %v103_v31, %v91_v32  ;;  %v116_v36 = vmul.f32 %v115_v53, %v110_v34 }
  0xb5   :  { %v117_v39 = vadd.f32 %v116_v36, %v104_v35 }
  0xb7   :  { %v130_v40 = vadd.f32 %v129_v38, %v117_v39 }
  0xf7   :  { %v141_v41 = vpop.permute.xlu0 %140 }
  0xf8   :  { %v143_v42 = vadd.f32 %v141_v41, %v130_v40 }
  0xfb   :  { %v167_v43 = vpop.permute.xlu0 %166  ;;  %v154_v37 = vpop.permute.xlu1 %153 }
  0xfc   :  { %v156_v44 = vadd.f32 %v154_v37, %v143_v42 }
  0xfe   :  { %v169_v46 = vadd.f32 %v167_v43, %v156_v44 }
  0xff   :  { %v193_v47 = vpop.permute.xlu0 %192  ;;  %v180_v48 = vpop.permute.xlu1 %179 }
 0x100   :  { %v182_v49 = vadd.f32 %v180_v48, %v169_v46 }
 0x102   :  { %v195_v50 = vadd.f32 %v193_v47, %v182_v49 }
 0x103   :  { %v219_v45 = vpop.permute.xlu0 %218  ;;  %v206_v51 = vpop.permute.xlu1 %205 }
 0x104   :  { %v208_v52 = vadd.f32 %v206_v51, %v195_v50 }
 0x106   :  { %v221_v54 = vadd.f32 %v219_v45, %v208_v52 }
 0x107   :  { %v245_v55 = vpop.permute.xlu0 %244  ;;  %v232_v56 = vpop.permute.xlu1 %231 }
 0x108   :  { %v234_v53 = vadd.f32 %v232_v56, %v221_v54 }
 0x10a   :  { %v247_v57 = vadd.f32 %v245_v55, %v234_v53 }
 0x10b   :  { %v271_v58 = vpop.permute.xlu0 %270  ;;  %v258_v59 = vpop.permute.xlu1 %257 }
 0x10c   :  { %v260_v60 = vadd.f32 %v258_v59, %v247_v57 }
 0x10e   :  { %v273_v61 = vadd.f32 %v271_v58, %v260_v60 }
 0x10f   :  { %v297_v62 = vpop.permute.xlu0 %296  ;;  %v284_v63 = vpop.permute.xlu1 %283 }
 0x110   :  { %v286_v0 = vadd.f32 %v284_v63, %v273_v61 }
 0x112   :  { %v299_v1 = vadd.f32 %v297_v62, %v286_v0 }
 0x113   :  { %v310_v2 = vpop.permute.xlu1 %309  ;;  %v323_v4 = vpop.permute.xlu0 %322 }
 0x114   :  { %v312_v3 = vadd.f32 %v310_v2, %v299_v1 }
 0x116   :  { %v325_v5 = vadd.f32 %v323_v4, %v312_v3 }
 0x117   :  { %v336_v6 = vpop.permute.xlu1 %335 }
 0x118   :  { %v338_v7 = vadd.f32 %v336_v6, %v325_v5 }
 0x11a   :  { %340 = vst.msk [vmem:[#allocation2] sm:$0xff] %vm339_vm1, %v338_v7 }
 0x11b   :  { %396 = shalt.err (!%p393_p4)
}
 0x11c   :  { %s397_s14 = scalar_lea.hbm %s550_s3, 128 }
 0x11d   :  { %p398_p5 = scmp.ne.s32.totalorder %s550_s3, %s397_s14  ;;  %p401_p6 = scmp.lt.u32.totalorder %s397_s14, %s550_s3 }
 0x11f   :  { %p403_p7 = pnand %p401_p6, %p398_p5 }
 0x121   :  { %406 = shalt.err (!%p403_p7)
}
 0x122   :  { %350 = dma.vmem_to_hbm [thread:$0]  %s348_s10, 128, %s550_s3, [#allocation3]  }
 0x123   :  { %407 = dma.done.wait [#allocation3], 128  }
 0x124   :  { %408 = vsyncadd [#allocation3], 4294967168 }
 0x125   :  { %354 = vsyncpa [#allocation3], 1 }

</bundles_post_ra>
